<compile_context>
chip_gen: v7x
topology: tpu7x:2x2x1
jax: 0.10.0
libtpu: 0.0.40
codegen_flags: <defaults>
</compile_context>

<pallas_src>
import math
import functools

import jax
import jax.numpy as jnp
from jax.experimental import pallas as pl
from jax.experimental.pallas import tpu as pltpu

NEG_INF = -1e30  # large finite negative; avoids exp(-inf - (-inf)) = NaN issues


@functools.lru_cache(maxsize=1)
def _vmem_limit_bytes():
    """~3/4 of the chip's VMEM (96 MiB on 128-MiB chips, 48 MiB on v7x)."""
    try:
        info = pltpu.get_tpu_info()
        cap = getattr(info, "vmem_capacity_bytes", None)
        if cap:
            return int(min(cap * 3 // 4, 100 * 1024 * 1024))
    except Exception:
        pass
    return 48 * 1024 * 1024


def _divisor_tile(dim, cap, align):
    """Largest tile <= cap that evenly divides `dim` and is `align`-aligned.
    Falls back to the full dimension (always legal via the full-dim escape
    hatch of the (8,128) BlockSpec rule)."""
    if dim <= cap:
        return dim
    for t in range(cap, 0, -1):
        if dim % t == 0 and t % align == 0:
            return t
    return dim


def _head_group(n_head, head_dim):
    """Smallest #heads per group so the group's channel width is 128-lane
    aligned; falls back to all heads (group width == C, full-dim escape)."""
    for hg in range(1, n_head + 1):
        if n_head % hg == 0 and (hg * head_dim) % 128 == 0:
            return hg
    return n_head


def _attn_tiles(Tq, Tk, Dg, hg, D, qkv_itemsize, return_weights, budget):
    """Pick (tq, tk) so the estimated resident VMEM fits `budget`."""
    tq_cap, tk_cap = 256, 256
    tq = tk = None
    for _ in range(8):
        tq = _divisor_tile(Tq, tq_cap, 8)
        tk = _divisor_tile(Tk, tk_cap, 128)
        need = 2 * (tq + 2 * tk + tq) * Dg * qkv_itemsize      # q,k,v,y double-buffered
        need += hg * tq * (D + 2) * 4                          # f32 m/l/acc scratch
        if return_weights:
            need += 2 * hg * tq * Tk * 4                       # resident att out block
        if need <= budget:
            break
        if tk_cap > 128:
            tk_cap //= 2
        elif tq_cap > 8:
            tq_cap //= 2
        else:
            break
    return tq, tk


def _build_step_tables(nq, nk, tq, tk, causal):
    """Row-major enumeration of visited (q-block, kv-block) pairs.
    Causal rows stop at the diagonal block -> dead blocks never DMA'd."""
    qb, kb, last = [], [], []
    for qi in range(nq):
        k_hi = min(nk - 1, (qi * tq + tq - 1) // tk) if causal else nk - 1
        for ki in range(k_hi + 1):
            qb.append(qi)
            kb.append(ki)
            last.append(1 if ki == k_hi else 0)
    return (jnp.asarray(qb, jnp.int32), jnp.asarray(kb, jnp.int32),
            jnp.asarray(last, jnp.int32))


# ---------------------------------------------------------------------------
# Tiled, pipelined linear kernel:  out = x @ W + b      (W is (Cin, Cout))
# ---------------------------------------------------------------------------
def _linear_kernel(x_ref, w_ref, b_ref, o_ref, acc_ref):
    @pl.when(pl.program_id(2) == 0)
    def _init():
        acc_ref[...] = jnp.zeros_like(acc_ref)

    acc_ref[...] += jnp.dot(x_ref[...], w_ref[...],
                            preferred_element_type=jnp.float32)

    @pl.when(pl.program_id(2) == pl.num_programs(2) - 1)
    def _finalize():
        o_ref[...] = (acc_ref[...] + b_ref[...]).astype(o_ref.dtype)


def pallas_linear(x2d, w, b, *, out_dtype=jnp.float32,
                  tm_cap=512, tn_cap=512, tk_cap=512):
    """x2d: (N, Cin); w: (Cin, Cout) (already in streaming dtype); b: (Cout,) f32."""
    N, Cin = x2d.shape
    Cout = w.shape[1]
    tm = _divisor_tile(N, tm_cap, 8)
    tn = _divisor_tile(Cout, tn_cap, 128)
    tk = _divisor_tile(Cin, tk_cap, 128)
    grid = (N // tm, Cout // tn, Cin // tk)

    return pl.pallas_call(
        _linear_kernel,
        out_shape=jax.ShapeDtypeStruct((N, Cout), out_dtype),
        grid_spec=pltpu.PrefetchScalarGridSpec(
            num_scalar_prefetch=0,
            grid=grid,
            in_specs=[
                pl.BlockSpec((tm, tk), lambda i, j, k: (i, k)),
                pl.BlockSpec((tk, tn), lambda i, j, k: (k, j)),
                pl.BlockSpec((1, tn), lambda i, j, k: (0, j)),
            ],
            out_specs=pl.BlockSpec((tm, tn), lambda i, j, k: (i, j)),
            scratch_shapes=[pltpu.VMEM((tm, tn), jnp.float32)],
        ),
        compiler_params=pltpu.CompilerParams(
            dimension_semantics=("parallel", "parallel", "arbitrary"),
            vmem_limit_bytes=_vmem_limit_bytes(),
        ),
    )(x2d, w, b.reshape(1, Cout))


# ---------------------------------------------------------------------------
# Flash-style multi-head attention kernel.
# Grid = (batch, head_group, step), where `step` walks a scalar-prefetched
# table of (q-block, kv-block) pairs (causal skips dead blocks entirely).
# I/O stays packed lane-dense (B, T, C); each head group is a 128-aligned
# slice of C selected by the BlockSpec (no wrapper transposes).
# ---------------------------------------------------------------------------
def _mha_flash_kernel(qblk_ref, kblk_ref, last_ref,          # scalar prefetch (SMEM)
                      q_ref, k_ref, v_ref,                   # inputs (VMEM blocks)
                      y_ref, *rest,                          # outputs + scratch
                      heads_per_group, head_dim, causal, tq, tk,
                      kv_total, return_weights):
    if return_weights:
        att_ref, m_sc, l_sc, acc_sc = rest
    else:
        att_ref = None
        m_sc, l_sc, acc_sc = rest

    t = pl.program_id(2)
    qb = qblk_ref[t]                     # q block index
    kb = kblk_ref[t]                     # kv block index
    is_first = kb == 0
    is_last = last_ref[t] == 1

    @pl.when(is_first)
    def _init():
        m_sc[...] = jnp.full(m_sc.shape, NEG_INF, dtype=m_sc.dtype)
        l_sc[...] = jnp.zeros(l_sc.shape, dtype=l_sc.dtype)
        acc_sc[...] = jnp.zeros(acc_sc.shape, dtype=acc_sc.dtype)
        if return_weights and causal:
            # Never-visited / masked columns stay at NEG_INF and normalize to 0.
            att_ref[...] = jnp.full(att_ref.shape, NEG_INF, dtype=att_ref.dtype)

    q_blk = q_ref[0]    # (tq, Dg)  Dg = heads_per_group * head_dim
    k_blk = k_ref[0]    # (tk, Dg)
    v_blk = v_ref[0]    # (tk, Dg)

    if causal:
        row = qb * tq + jax.lax.broadcasted_iota(jnp.int32, (tq, tk), 0)
        col = kb * tk + jax.lax.broadcasted_iota(jnp.int32, (tq, tk), 1)
        keep = col <= row

    for h in range(heads_per_group):
        sl = slice(h * head_dim, (h + 1) * head_dim)
        qh = q_blk[:, sl]               # already in streaming dtype (f32/bf16)
        kh = k_blk[:, sl]
        vh = v_blk[:, sl]

        # Q @ K^T without an explicit transpose: contract the last dims.
        # (1/sqrt(D) is already folded into Wq/bq at prep time.)
        s = jax.lax.dot_general(qh, kh, (((1,), (1,)), ((), ())),
                                preferred_element_type=jnp.float32)   # (tq, tk)
        if causal:
            s = jnp.where(keep, s, NEG_INF)

        if return_weights:
            if tk == kv_total:                 # single kv block: static store
                att_ref[0, h] = s
            else:                              # 128-aligned dynamic lane offset
                col0 = pl.multiple_of(kb * tk, tk)
                att_ref[0, h, :, pl.ds(col0, tk)] = s

        # Online softmax (f32) for head h.
        m_prev = m_sc[h]                                          # (tq, 1)
        m_new = jnp.maximum(m_prev, jnp.max(s, axis=-1, keepdims=True))
        alpha = jnp.exp(m_prev - m_new)
        p = jnp.exp(s - m_new)                                    # (tq, tk) f32
        l_sc[h] = alpha * l_sc[h] + jnp.sum(p, axis=-1, keepdims=True)
        acc_sc[h] = alpha * acc_sc[h] + jnp.dot(
            p.astype(vh.dtype), vh, preferred_element_type=jnp.float32)
        m_sc[h] = m_new

    @pl.when(is_last)
    def _finalize():
        l = l_sc[...]                                             # (Hg, tq, 1)
        inv_l = pl.reciprocal(l, approx=True)                     # EUP slot
        inv_l = inv_l * (2.0 - l * inv_l)                         # Newton -> f32 exact
        y_heads = [(acc_sc[h] * inv_l[h]).astype(y_ref.dtype)
                   for h in range(heads_per_group)]
        # One lane-dense store per group (no masked per-head partial stores).
        y_ref[0] = y_heads[0] if heads_per_group == 1 else jnp.concatenate(
            y_heads, axis=-1)
        if return_weights:
            att_ref[0] = jnp.exp(att_ref[0] - m_sc[...]) * inv_l


def pallas_mha_attention(q, k, v, *, n_head, causal, return_weights=True):
    """q: (B, Tq, C); k, v: (B, Tk, C) packed lane-dense (C = H*D), any dtype.
    Returns (y (B,Tq,C) in q.dtype, attn (B,H,Tq,Tk) f32 or None)."""
    B, Tq, C = q.shape
    Tk = k.shape[1]
    D = C // n_head
    hg = _head_group(n_head, D)
    Dg = hg * D
    n_groups = n_head // hg

    budget = max(_vmem_limit_bytes() - 8 * 1024 * 1024, 8 * 1024 * 1024)
    tq, tk = _attn_tiles(Tq, Tk, Dg, hg, D, jnp.dtype(q.dtype).itemsize,
                         return_weights, budget)
    nq, nk = Tq // tq, Tk // tk
    qtbl, ktbl, ltbl = _build_step_tables(nq, nk, tq, tk, causal)
    n_steps = int(qtbl.shape[0])

    kernel = functools.partial(
        _mha_flash_kernel, heads_per_group=hg, head_dim=D, causal=causal,
        tq=tq, tk=tk, kv_total=Tk, return_weights=return_weights)

    out_shape = [jax.ShapeDtypeStruct((B, Tq, C), q.dtype)]
    out_specs = [pl.BlockSpec((1, tq, Dg), lambda b, g, t, qt, kt, lt: (b, qt[t], g))]
    if return_weights:
        # O(Tq*Tk) output only materialized when the caller asks for it
        # (PyTorch module semantics); the block stays VMEM-resident per q row.
        out_shape.append(jax.ShapeDtypeStruct((B, n_head, Tq, Tk), jnp.float32))
        out_specs.append(pl.BlockSpec((1, hg, tq, Tk),
                                      lambda b, g, t, qt, kt, lt: (b, g, qt[t], 0)))

    outs = pl.pallas_call(
        kernel,
        out_shape=tuple(out_shape),
        grid_spec=pltpu.PrefetchScalarGridSpec(
            num_scalar_prefetch=3,
            grid=(B, n_groups, n_steps),
            in_specs=[
                pl.BlockSpec((1, tq, Dg), lambda b, g, t, qt, kt, lt: (b, qt[t], g)),
                pl.BlockSpec((1, tk, Dg), lambda b, g, t, qt, kt, lt: (b, kt[t], g)),
                pl.BlockSpec((1, tk, Dg), lambda b, g, t, qt, kt, lt: (b, kt[t], g)),
            ],
            out_specs=tuple(out_specs),
            scratch_shapes=[
                pltpu.VMEM((hg, tq, 1), jnp.float32),   # running max
                pltpu.VMEM((hg, tq, 1), jnp.float32),   # running sum
                pltpu.VMEM((hg, tq, D), jnp.float32),   # output accumulator
            ],
        ),
        compiler_params=pltpu.CompilerParams(
            dimension_semantics=("parallel", "parallel", "arbitrary"),
            vmem_limit_bytes=_vmem_limit_bytes(),
        ),
    )(qtbl, ktbl, ltbl, q, k, v)

    if return_weights:
        return outs[0], outs[1]
    return outs[0], None


# ---------------------------------------------------------------------------
# Parameter prep (done ONCE): fuse QKV / KV, transpose to (Cin, Cout),
# fold 1/sqrt(head_dim) into Wq/bq, cast weights to the streaming dtype.
# ---------------------------------------------------------------------------
def prepare_params(params, n_head, compute_dtype=jnp.float32):
    C = params["wq"].shape[0]
    D = C // n_head
    scale = 1.0 / math.sqrt(D)
    wq, bq = params["wq"] * scale, params["bq"] * scale
    wk, bk = params["wk"], params["bk"]
    wv, bv = params["wv"], params["bv"]
    cd = compute_dtype
    return {
        "n_head": n_head,
        "compute_dtype": cd,
        "w_qkv": jnp.concatenate([wq, wk, wv], axis=0).T.astype(cd),   # (C, 3C)
        "b_qkv": jnp.concatenate([bq, bk, bv], axis=0).astype(jnp.float32),
        "w_q": wq.T.astype(cd), "b_q": bq.astype(jnp.float32),
        "w_kv": jnp.concatenate([wk, wv], axis=0).T.astype(cd),        # (C, 2C)
        "b_kv": jnp.concatenate([bk, bv], axis=0).astype(jnp.float32),
        "w_k": wk.T.astype(cd), "b_k": bk.astype(jnp.float32),
        "w_v": wv.T.astype(cd), "b_v": bv.astype(jnp.float32),
        "w_o": params["wo"].T.astype(cd), "b_o": params["bo"].astype(jnp.float32),
    }


# ---------------------------------------------------------------------------
# MultiHeadAttention forward (glue in plain JAX, hot paths in Pallas kernels)
# ---------------------------------------------------------------------------
def multi_head_attention(prep, q_x, k_x, v_x, *, is_masked=False,
                         return_attn_weights=True):
    n_head = prep["n_head"]
    cd = prep["compute_dtype"]
    B_q, T_q, C = q_x.shape
    B_kv, T_kv, _ = k_x.shape

    xq = q_x.astype(cd)
    if (q_x is k_x) and (k_x is v_x):
        # Self-attention: fused QKV projection (x read once, one launch).
        qkv = pallas_linear(xq.reshape(B_q * T_q, C), prep["w_qkv"],
                            prep["b_qkv"], out_dtype=cd)
        q, k, v = jnp.split(qkv, 3, axis=-1)
        q = q.reshape(B_q, T_q, C)
        k = k.reshape(B_q, T_q, C)
        v = v.reshape(B_q, T_q, C)
    else:
        q = pallas_linear(xq.reshape(B_q * T_q, C), prep["w_q"], prep["b_q"],
                          out_dtype=cd).reshape(B_q, T_q, C)
        xkv = k_x.astype(cd)
        if k_x is v_x:
            # Cross-attention: fuse at least K and V (same source).
            kv = pallas_linear(xkv.reshape(B_kv * T_kv, C), prep["w_kv"],
                               prep["b_kv"], out_dtype=cd)
            k, v = jnp.split(kv, 2, axis=-1)
            k = k.reshape(B_kv, T_kv, C)
            v = v.reshape(B_kv, T_kv, C)
        else:
            k = pallas_linear(xkv.reshape(B_kv * T_kv, C), prep["w_k"],
                              prep["b_k"], out_dtype=cd).reshape(B_kv, T_kv, C)
            v = pallas_linear(v_x.astype(cd).reshape(B_kv * T_kv, C),
                              prep["w_v"], prep["b_v"],
                              out_dtype=cd).reshape(B_kv, T_kv, C)

    # Packed (B, T, H*D) layout straight into the attention kernel — no
    # (B,H,T,D) transposes in the wrapper; y comes back as (B, T, C).
    # TODO(synk): arbitrary user-supplied `mask` tensor not plumbed through;
    # only mask=None and the causal (is_masked=True) path are implemented.
    y, attn = pallas_mha_attention(q, k, v, n_head=n_head, causal=is_masked,
                                   return_weights=return_attn_weights)

    y = pallas_linear(y.reshape(B_q * T_q, C), prep["w_o"], prep["b_o"],
                      out_dtype=jnp.float32).reshape(B_q, T_q, C)
    # attn_dropout / resid_dropout are identity in eval mode.
    return y, attn


# ---------------------------------------------------------------------------
# Pure-JAX reference (mirrors the PyTorch module) and parameter init
# ---------------------------------------------------------------------------
def reference_mha(params, q_x, k_x, v_x, *, n_head, is_masked):
    B, Tq, C = q_x.shape
    Tk = k_x.shape[1]
    D = C // n_head
    q = q_x @ params["wq"].T + params["bq"]
    k = k_x @ params["wk"].T + params["bk"]
    v = v_x @ params["wv"].T + params["bv"]
    q = q.reshape(B, Tq, n_head, D).transpose(0, 2, 1, 3)
    k = k.reshape(B, Tk, n_head, D).transpose(0, 2, 1, 3)
    v = v.reshape(B, Tk, n_head, D).transpose(0, 2, 1, 3)
    att = (q @ jnp.swapaxes(k, -1, -2)) * (1.0 / math.sqrt(D))
    if is_masked:
        mask = jnp.tril(jnp.ones((Tq, Tk)))[None, None]
        att = jnp.where(mask == 0, -jnp.inf, att)
    att = jax.nn.softmax(att, axis=-1)
    y = (att @ v).transpose(0, 2, 1, 3).reshape(B, Tq, C)
    y = y @ params["wo"].T + params["bo"]
    return y, att


def init_params(key, n_embd):
    bound = 1.0 / math.sqrt(n_embd)
    keys = jax.random.split(key, 8)
    names = ["wq", "bq", "wk", "bk", "wv", "bv", "wo", "bo"]
    shapes = [(n_embd, n_embd), (n_embd,)] * 4
    return {
        name: jax.random.uniform(k, shape, dtype=jnp.float32,
                                 minval=-bound, maxval=bound)
        for name, k, shape in zip(names, keys, shapes)
    }


if __name__ == "__main__":
    # Small config: n_embd=32, n_head=4, seq=8, dropout=0 (eval mode)
    B, T, C, H = 2, 8, 32, 4

    root = jax.random.PRNGKey(0)
    k_p, k_x = jax.random.split(root, 2)
    params = init_params(k_p, C)
    x = jax.random.normal(k_x, (B, T, C), dtype=jnp.float32)

    prep_f32 = prepare_params(params, n_head=H, compute_dtype=jnp.float32)

    # 1) Causal self-attention (fused QKV path), attention weights returned.
    y, attn = multi_head_attention(prep_f32, x, x, x, is_masked=True,
                                   return_attn_weights=True)
    y = jax.block_until_ready(y)
    attn = jax.block_until_ready(attn)
    y_ref, attn_ref = reference_mha(params, x, x, x, n_head=H, is_masked=True)

    assert y.shape == (B, T, C)
    assert attn.shape == (B, H, T, T)
    assert jnp.allclose(jnp.sum(attn, axis=-1), 1.0, atol=1e-4)
    assert jnp.allclose(y, y_ref, rtol=1e-4, atol=1e-4)
    assert jnp.allclose(attn, attn_ref, rtol=1e-4, atol=1e-5)

    # 2) Cross-attention (fused K/V path), no weights materialized (fast path).
    kv_src = jax.random.normal(jax.random.PRNGKey(1), (B, T, C), dtype=jnp.float32)
    y2, attn2 = multi_head_attention(prep_f32, x, kv_src, kv_src,
                                     is_masked=False, return_attn_weights=False)
    y2 = jax.block_until_ready(y2)
    y2_ref, _ = reference_mha(params, x, kv_src, kv_src, n_head=H, is_masked=False)
    assert attn2 is None
    assert jnp.allclose(y2, y2_ref, rtol=1e-4, atol=1e-4)

    # 3) bf16 streaming path (q/k/v/y in bf16 HBM/VMEM, f32 accumulate/softmax).
    #    Precision mode for inference on v6e/v7x — not bit-exact with the ref.
    prep_bf16 = prepare_params(params, n_head=H, compute_dtype=jnp.bfloat16)
    y3, _ = multi_head_attention(prep_bf16, x, x, x, is_masked=True,
                                 return_attn_weights=False)
    y3 = jax.block_until_ready(y3)
    assert jnp.allclose(y3, y_ref, rtol=1e-1, atol=1e-1)

    print("KERNEL_OK")
</pallas_src>

<mosaic_0001>
module attributes {stable_mosaic.version = 11 : i64} {
  func.func @_linear_kernel(%arg0: i32, %arg1: i32, %arg2: i32, %arg3: memref<16x32xf32, #tpu.memory_space<vmem>>, %arg4: memref<32x96xf32, #tpu.memory_space<vmem>>, %arg5: memref<1x96xf32, #tpu.memory_space<vmem>>, %arg6: memref<16x96xf32, #tpu.memory_space<vmem>>, %arg7: memref<16x96xf32, #tpu.memory_space<vmem>>) attributes {dimension_semantics = [#tpu.dimension_semantics<parallel>, #tpu.dimension_semantics<parallel>, #tpu.dimension_semantics<arbitrary>], iteration_bounds = array<i64: 1, 1, 1>, scalar_prefetch = 0 : i64, scratch_operands = 1 : i64, tpu.core_type = #tpu.core_type<tc>, window_params = [{transform_indices = @transform_0, window_bounds = array<i64: 16, 32>}, {transform_indices = @transform_1, window_bounds = array<i64: 32, 96>}, {transform_indices = @transform_2, window_bounds = array<i64: 1, 96>}, {transform_indices = @transform_3, window_bounds = array<i64: 16, 96>}]} {
    %c0_i32 = arith.constant 0 : i32
    %0 = arith.cmpi eq, %arg2, %c0_i32 : i32
    %1 = arith.extui %0 : i1 to i32
    %c0_i32_0 = arith.constant 0 : i32
    %2 = arith.cmpi ne, %1, %c0_i32_0 : i32
    scf.if %2 {
      %cst_10 = arith.constant 0.000000e+00 : f32
      %12 = vector.broadcast %cst_10 : f32 to vector<16x96xf32>
      %c0_11 = arith.constant 0 : index
      %c0_12 = arith.constant 0 : index
      %13 = vector.load %arg7[%c0_11, %c0_12] : memref<16x96xf32, #tpu.memory_space<vmem>>, vector<16x96xf32>
      tpu.vector_store %arg7[%c0_11, %c0_12], %12 {strides = array<i32>} : memref<16x96xf32, #tpu.memory_space<vmem>>, vector<16x96xf32>,
    } else {
    }
    %c0 = arith.constant 0 : index
    %c0_1 = arith.constant 0 : index
    %3 = vector.load %arg7[%c0, %c0_1] : memref<16x96xf32, #tpu.memory_space<vmem>>, vector<16x96xf32>
    %c0_2 = arith.constant 0 : index
    %c0_3 = arith.constant 0 : index
    %4 = vector.load %arg3[%c0_2, %c0_3] : memref<16x32xf32, #tpu.memory_space<vmem>>, vector<16x32xf32>
    %c0_4 = arith.constant 0 : index
    %c0_5 = arith.constant 0 : index
    %5 = vector.load %arg4[%c0_4, %c0_5] : memref<32x96xf32, #tpu.memory_space<vmem>>, vector<32x96xf32>
    %cst = arith.constant dense<0.000000e+00> : vector<16x96xf32>
    %6 = tpu.matmul %4, %5, %cst {dimension_numbers = #tpu.dot_dimension_numbers<[1], [0], [0], [1], [0, 0, 1, 1], [], []>} : vector<16x32xf32>, vector<32x96xf32>, vector<16x96xf32> -> vector<16x96xf32>
    %7 = arith.addf %3, %6 : vector<16x96xf32>
    %c0_6 = arith.constant 0 : index
    %c0_7 = arith.constant 0 : index
    %8 = vector.load %arg7[%c0_6, %c0_7] : memref<16x96xf32, #tpu.memory_space<vmem>>, vector<16x96xf32>
    tpu.vector_store %arg7[%c0_6, %c0_7], %7 {strides = array<i32>} : memref<16x96xf32, #tpu.memory_space<vmem>>, vector<16x96xf32>,
    %c0_i32_8 = arith.constant 0 : i32
    %9 = arith.cmpi eq, %arg2, %c0_i32_8 : i32
    %10 = arith.extui %9 : i1 to i32
    %c0_i32_9 = arith.constant 0 : i32
    %11 = arith.cmpi ne, %10, %c0_i32_9 : i32
    scf.if %11 {
      %c0_10 = arith.constant 0 : index
      %c0_11 = arith.constant 0 : index
      %12 = vector.load %arg7[%c0_10, %c0_11] : memref<16x96xf32, #tpu.memory_space<vmem>>, vector<16x96xf32>
      %c0_12 = arith.constant 0 : index
      %c0_13 = arith.constant 0 : index
      %13 = vector.load %arg5[%c0_12, %c0_13] : memref<1x96xf32, #tpu.memory_space<vmem>>, vector<1x96xf32>
      %14 = vector.broadcast %13 : vector<1x96xf32> to vector<16x96xf32>
      %15 = arith.addf %12, %14 : vector<16x96xf32>
      %c0_14 = arith.constant 0 : index
      %c0_15 = arith.constant 0 : index
      %16 = vector.load %arg6[%c0_14, %c0_15] : memref<16x96xf32, #tpu.memory_space<vmem>>, vector<16x96xf32>
      tpu.vector_store %arg6[%c0_14, %c0_15], %15 {strides = array<i32>} : memref<16x96xf32, #tpu.memory_space<vmem>>, vector<16x96xf32>,
    } else {
    }
    return
  }
  func.func @transform_0(%arg0: i32, %arg1: i32, %arg2: i32) -> (i32, i32) {
    %c0_i32 = arith.constant 0 : i32
    return %arg0, %arg2 : i32, i32
  }
  func.func @transform_1(%arg0: i32, %arg1: i32, %arg2: i32) -> (i32, i32) {
    %c0_i32 = arith.constant 0 : i32
    return %arg2, %arg1 : i32, i32
  }
  func.func @transform_2(%arg0: i32, %arg1: i32, %arg2: i32) -> (i32, i32) {
    %c0_i32 = arith.constant 0 : i32
    %c0_i32_0 = arith.constant 0 : i32
    return %c0_i32, %arg1 : i32, i32
  }
  func.func @transform_3(%arg0: i32, %arg1: i32, %arg2: i32) -> (i32, i32) {
    %c0_i32 = arith.constant 0 : i32
    return %arg0, %arg1 : i32, i32
  }
}

</mosaic_0001>

<bundles_post_ra>
// kernel: tpu_custom_call.1
= control target key start
LH: loop header
LB: loop body
LE: loop exit
PB: predicated region body
PF: predicated region fallthrough
CT: control target
= control target key end

     0   :  { %8 = vsyncpa [#allocation4], 0  ;;  %s365_s0 = inlined_call_operand.hbm [shape: f32[16,32], index: 0, kind: input, shape index: {}]   ;;  %s366_s1 = inlined_call_operand.hbm [shape: f32[32,96], index: 1, kind: input, shape index: {}]   ;;  %s367_s2 = inlined_call_operand.vmem [shape: f32[1,96], index: 2, kind: input, shape index: {}]   ;;  %s368_s3 = inlined_call_operand.hbm [shape: f32[16,96], index: 3, kind: output, shape index: {}]  }
   0x1   :  { %9 = vsyncpa [#allocation7], 0 }
   0x2   :  { %10 = vsyncpa [#allocation5], 0  ;;  %s285_s12 = smov [#allocation3]   ;;  %s213_s16 = scalar_lea.hbm %s365_s0, 256 }
   0x3   :  { %s16_s13 = sshll.u32 %s285_s12, 4  ;;  %p214_p0 = scmp.ne.s32.totalorder %s365_s0, %s213_s16  ;;  %s17_s13 = int_to_ptr.vmem [resolvable:$true] %s16_s13 }
   0x4   :  { %p217_p1 = scmp.lt.u32.totalorder %s213_s16, %s365_s0 }
   0x6   :  { %p219_p2 = pnand %p217_p1, %p214_p0 }
   0x8   :  { %222 = shalt.err (!%p219_p2)
}
   0x9   :  { %s223_s21 = scalar_lea.vmem %s17_s13, 256  ;;  %p228_p4 = scmp.lt.s32.totalorder %s17_s13, %s17_s13 }
   0xa   :  { %p224_p3 = scmp.ne.s32.totalorder %s17_s13, %s223_s21  ;;  %p229_p5 = scmp.lt.s32.totalorder %s223_s21, %s223_s21 }
   0xc   :  { %p230_p6 = por %p229_p5, %p228_p4 }
   0xe   :  { %p231_p7 = pnand %p230_p6, %p224_p3 }
  0x10   :  { %234 = shalt.err (!%p231_p7)
}
  0x11   :  { %s286_s22 = smov 128   ;;  %s287_s23 = smov 8  }
  0x12   :  { %22 = dma.hbm_to_vmem [thread:$0]  %s365_s0, 256, %s17_s13, [#allocation4], %s286_s22, %s286_s22, %s287_s23  }
  0x13   :  { %s288_s26 = smov [#allocation6]   ;;  %s235_s30 = scalar_lea.hbm %s366_s1, 512 }
  0x14   :  { %s28_s27 = sshll.u32 %s288_s26, 4  ;;  %p236_p8 = scmp.ne.s32.totalorder %s366_s1, %s235_s30  ;;  %s29_s27 = int_to_ptr.vmem [resolvable:$true] %s28_s27 }
  0x15   :  { %p239_p9 = scmp.lt.u32.totalorder %s235_s30, %s366_s1 }
  0x17   :  { %p241_p10 = pnand %p239_p9, %p236_p8 }
  0x19   :  { %244 = shalt.err (!%p241_p10)
}
  0x1a   :  { %s245_s8 = scalar_lea.vmem %s29_s27, 512  ;;  %p250_p12 = scmp.lt.s32.totalorder %s29_s27, %s29_s27 }
  0x1b   :  { %p246_p11 = scmp.ne.s32.totalorder %s29_s27, %s245_s8  ;;  %p251_p13 = scmp.lt.s32.totalorder %s245_s8, %s245_s8 }
  0x1d   :  { %p252_p0 = por %p251_p13, %p250_p12 }
  0x1f   :  { %p253_p1 = pnand %p252_p0, %p246_p11 }
  0x21   :  { %256 = shalt.err (!%p253_p1)
}
  0x22   :  { %34 = dma.hbm_to_vmem [thread:$0]  %s366_s1, 512, %s29_s27, [#allocation7], %s286_s22, %s286_s22, %s287_s23  }
  0x23   :  { %279 = dma.done.wait [#allocation4], 256  }
  0x24   :  { %280 = vsyncadd [#allocation4], 4294967040 }
  0x25   :  { %281 = dma.done.wait [#allocation7], 512  }
  0x26   :  { %282 = vsyncadd [#allocation7], 4294966784  ;;  %vm47_vm0 = vcmask 785408   ;;  %v289_v0 = vmov 0.0   ;;  %vm58_vm1 = vcmask 261120   ;;  %v54_v1 = vld [vmem:[#allocation6] sm:$0xff] }
  0x27   :  { %49 = vst.msk [vmem:[#allocation2 + $0x8] sm:$0xff] %vm47_vm0, %v289_v0  ;;  %48 = vst.msk [vmem:[#allocation2] sm:$0xff] %vm47_vm0, %v289_v0  ;;  %v55_v2 = vld [vmem:[#allocation6 + $0x8] sm:$0xff]  ;;  %v56_v3 = vld [vmem:[#allocation6 + $0x10] sm:$0xff]  ;;  %s290_s11 = smov [#allocation8]  }
  0x28   :  { %v199_v4 = vpack.c.bf16 %v55_v2, %v54_v1  ;;  %v57_v5 = vld [vmem:[#allocation6 + $0x18] sm:$0xff]  ;;  %v52_v6 = vld [vmem:[#allocation3] sm:$0xff]  ;;  %v181_v15 = vld [vmem:[%s367_s2] ss:$0 sm:$0xff]  ;;  %s166_s12 = sshll.u32 %s290_s11, 4  ;;  %s167_s12 = int_to_ptr.vmem [resolvable:$true] %s166_s12 }
  0x29   :  { %v203_v7 = vpack.c.bf16 %v57_v5, %v56_v3  ;;  %196 = vmatprep.mubr.msk.f32.mxu0 %vm58_vm1, %v52_v6  ;;  %v53_v8 = vld [vmem:[#allocation3 + $0x8] sm:$0xff]  ;;  %s257_s13 = scalar_lea.vmem %s167_s12, 256  ;;  %p262_p3 = scmp.lt.s32.totalorder %s167_s12, %s167_s12 }
  0x2a   :  { %200 = vmatprep.subr.bf16.mxu0 %v199_v4  ;;  %p258_p2 = scmp.ne.s32.totalorder %s167_s12, %s257_s13  ;;  %p263_p4 = scmp.lt.s32.totalorder %s257_s13, %s257_s13 }
  0x2b   :  { %202 = vmatpush3.bf16.msra.mxu0 %v199_v4 }
  0x2c   :  { %204 = vmatprep.subr.bf16.mxu0 %v203_v7  ;;  %p264_p5 = por %p263_p4, %p262_p3 }
  0x2e   :  { %v51_v9 = vld [vmem:[#allocation2 + $0x8] sm:$0xff]  ;;  %v50_v10 = vld [vmem:[#allocation2] sm:$0xff]  ;;  %p265_p6 = pnand %p264_p5, %p258_p2 }
  0x2f   :  { %206 = vmatpush3.bf16.msra.mxu0 %v203_v7 }
  0x32   :  { %197 = vmatmul.mubr.msk.f32.vlgmr.msra.gmra.mrb[0].mxu0 %vm58_vm1, %v53_v8 }
 0x105   :  { %v198_v11 = vpop.f32.mrb[0].mxu0 }
 0x106   :  { %v141_v12 = vadd.f32 %v198_v11, %v51_v9  ;;  %v131_v13 = vpop.f32.mrb[1].mxu0 }
 0x107   :  { %v140_v14 = vadd.f32 %v131_v13, %v50_v10 }
 0x108   :  { %144 = vst.msk [vmem:[#allocation2 + $0x8] sm:$0xff] %vm47_vm0, %v141_v12 }
 0x109   :  { %143 = vst.msk [vmem:[#allocation2] sm:$0xff] %vm47_vm0, %v140_v14 }
 0x10f   :  { %v149_v16 = vld [vmem:[#allocation2 + $0x8] sm:$0xff] }
 0x110   :  { %v148_v17 = vld [vmem:[#allocation2] sm:$0xff]  ;;  %v158_v18 = vadd.f32 %v181_v15, %v149_v16 }
 0x111   :  { %v157_v19 = vadd.f32 %v181_v15, %v148_v17 }
 0x112   :  { %160 = vst.msk [vmem:[#allocation8 + $0x8] sm:$0xff] %vm47_vm0, %v158_v18 }
 0x113   :  { %159 = vst.msk [vmem:[#allocation8] sm:$0xff] %vm47_vm0, %v157_v19 }
 0x114   :  { %268 = shalt.err (!%p265_p6)
}
 0x115   :  { %s269_s15 = scalar_lea.hbm %s368_s3, 256 }
 0x116   :  { %p270_p7 = scmp.ne.s32.totalorder %s368_s3, %s269_s15  ;;  %p273_p8 = scmp.lt.u32.totalorder %s269_s15, %s368_s3 }
 0x118   :  { %p275_p9 = pnand %p273_p8, %p270_p7 }
 0x11a   :  { %278 = shalt.err (!%p275_p9)
}
 0x11b   :  { %172 = dma.vmem_to_hbm [thread:$0]  %s167_s12, 256, %s368_s3, [#allocation5], %s286_s22, %s286_s22, %s287_s23  }
 0x11c   :  { %283 = dma.done.wait [#allocation5], 256  }
 0x11d   :  { %284 = vsyncadd [#allocation5], 4294967040 }
 0x11e   :  { %176 = vsyncpa [#allocation4], 1 }
 0x11f   :  { %177 = vsyncpa [#allocation7], 1 }
 0x120   :  { %178 = vsyncpa [#allocation5], 1 }

</bundles_post_ra>
